<compile_context>
chip_gen: v6e
topology: v6e:2x2x1
jax: 0.10.0
libtpu: 0.0.40
codegen_flags: <defaults>
</compile_context>

<pallas_src>
import functools

import jax
import jax.numpy as jnp
from jax.experimental import pallas as pl
from jax.experimental.pallas import tpu as pltpu


def _label_smoothing_kernel(x_ref, t_ref, out_ref, acc_ref, *,
                            confidence, smooth_w, n_true,
                            tile_n, steps_per_core, mask_rows):
    # x_ref: (TILE_N, C) logits (native dtype), t_ref: (TILE_N, 1) int32,
    # out_ref: (8, 128) f32 per-core partial block,
    # acc_ref: (TILE_N, 1) f32 per-row running sums.
    c = pl.program_id(0)
    i = pl.program_id(1)

    @pl.when(i == 0)
    def _():
        acc_ref[...] = jnp.zeros_like(acc_ref)

    # HBM -> VMEM streamed in native dtype; promote in-register for the math.
    x = x_ref[...].astype(jnp.float32)                      # (TILE_N, C)
    t = t_ref[...]                                          # (TILE_N, 1) int32
    col = jax.lax.broadcasted_iota(jnp.int32, x.shape, 1)   # (TILE_N, C)

    # Stable log-partition: logZ_i = m_i + log(sum_j exp(x_ij - m_i)).
    m = jnp.max(x, axis=-1, keepdims=True)                  # (TILE_N, 1)
    lse = jnp.log(jnp.sum(jnp.exp(x - m), axis=-1, keepdims=True))

    # Fused gather + smoothing mean: single weighted lane reduction.
    w = jnp.where(col == t, confidence + smooth_w, smooth_w)
    loss = (m + lse) - jnp.sum(w * x, axis=-1, keepdims=True)   # (TILE_N, 1)

    if mask_rows:
        # Select (NOT multiply-by-mask): garbage (NaN/Inf) in padded rows of a
        # ragged / duplicated block must not propagate into the accumulator.
        blk = c * steps_per_core + i
        row = jax.lax.broadcasted_iota(jnp.int32, loss.shape, 0) + blk * tile_n
        loss = jnp.where(row < n_true, loss, 0.0)

    acc_ref[...] += loss

    @pl.when(i == pl.num_programs(1) - 1)
    def _():
        psum = jnp.sum(acc_ref[...], axis=0, keepdims=True)      # (1, 1)
        r = jax.lax.broadcasted_iota(jnp.int32, out_ref.shape, 0)
        l = jax.lax.broadcasted_iota(jnp.int32, out_ref.shape, 1)
        out_ref[...] = jnp.where((r == 0) & (l == 0), psum, 0.0)


def label_smoothing_loss(x, target, smoothing=0.1):
    """x: (N, C) float logits; target: (N,) int. Returns scalar f32 loss."""
    N, C = x.shape
    confidence = 1.0 - smoothing
    itemsize = x.dtype.itemsize

    # --- Row tile: native-dtype tile ~2 MiB (measured pipelining plateau). ---
    row_bytes = max(C * itemsize, 1)
    target_tile_bytes = 2 << 20
    max_rows = max(target_tile_bytes // row_bytes, 8)
    if N <= 8:
        tile_n = N                      # block dim == full array dim is legal
    else:
        tile_n = int(min((N // 8) * 8, (max_rows // 8) * 8, 1024))
        tile_n = max(tile_n, 8)

    nblocks = pl.cdiv(N, tile_n)
    num_cores = 2 if nblocks >= 2 else 1   # v7x megacore; no-op on 1-TC chips
    spc = pl.cdiv(nblocks, num_cores)      # row-blocks per core
    mask_rows = (num_cores * spc * tile_n != N)

    # --- VMEM budget: 2x native tile (double buffer) + ~3x f32 temps. -------
    tile_native = tile_n * C * itemsize
    tile_f32 = tile_n * C * 4
    working = 2 * (tile_native + tile_n * 4) + 3 * tile_f32
    try:
        vmem_cap = int(pltpu.get_tpu_info().vmem_capacity_bytes)
    except Exception:
        vmem_cap = 64 << 20                # v7x floor
    vmem_limit = int(min(max(32 << 20, working + (4 << 20)),
                         max(vmem_cap - (4 << 20), 16 << 20)))

    t2d = target.astype(jnp.int32).reshape(N, 1)
    last_blk = nblocks - 1

    def in_index(c, i):
        # Clamp: fully-out-of-range (duplicated) blocks re-read the last real
        # block; their rows are zeroed by the in-kernel row mask.
        return (jnp.minimum(c * spc + i, last_blk), 0)

    kernel = functools.partial(
        _label_smoothing_kernel,
        confidence=float(confidence),
        smooth_w=float(smoothing) / float(C),
        n_true=N,
        tile_n=tile_n,
        steps_per_core=spc,
        mask_rows=mask_rows,
    )

    partials = pl.pallas_call(
        kernel,
        out_shape=jax.ShapeDtypeStruct((num_cores * 8, 128), jnp.float32),
        grid_spec=pltpu.PrefetchScalarGridSpec(
            num_scalar_prefetch=0,
            grid=(num_cores, spc),
            in_specs=[
                pl.BlockSpec((tile_n, C), in_index),
                pl.BlockSpec((tile_n, 1), in_index),
            ],
            out_specs=pl.BlockSpec((8, 128), lambda c, i: (c, 0)),
            scratch_shapes=[pltpu.VMEM((tile_n, 1), jnp.float32)],
        ),
        compiler_params=pltpu.CompilerParams(
            dimension_semantics=("parallel", "arbitrary"),
            vmem_limit_bytes=vmem_limit,
        ),
    )(x, t2d)
    # All elements except [8*c, 0] of each per-core block are zero.
    return jnp.sum(partials) * (1.0 / N)


def _reference(x, target, smoothing=0.1):
    confidence = 1.0 - smoothing
    logprobs = jax.nn.log_softmax(x.astype(jnp.float32), axis=-1)
    nll = -jnp.take_along_axis(logprobs, target.reshape(-1, 1), axis=-1)[:, 0]
    smooth = -jnp.mean(logprobs, axis=-1)
    return jnp.mean(confidence * nll + smoothing * smooth)


if __name__ == "__main__":
    key = jax.random.PRNGKey(0)
    kx, kt = jax.random.split(key)

    N, C = 8, 32                     # batch of 8 examples, 32 classes
    smoothing = 0.1

    x = jax.random.normal(kx, (N, C), dtype=jnp.float32)
    target = jax.random.randint(kt, (N,), 0, C, dtype=jnp.int32)

    loss = label_smoothing_loss(x, target, smoothing=smoothing)
    loss = jax.block_until_ready(loss)

    ref = _reference(x, target, smoothing=smoothing)
    assert jnp.allclose(loss, ref, atol=1e-5, rtol=1e-5), (loss, ref)

    print("KERNEL_OK")
</pallas_src>

<mosaic_0001>
module attributes {stable_mosaic.version = 11 : i64} {
  func.func @_label_smoothing_kernel(%arg0: i32, %arg1: i32, %arg2: memref<8x32xf32, #tpu.memory_space<vmem>>, %arg3: memref<8x1xi32, #tpu.memory_space<vmem>>, %arg4: memref<8x128xf32, #tpu.memory_space<vmem>>, %arg5: memref<8x1xf32, #tpu.memory_space<vmem>>) attributes {dimension_semantics = [#tpu.dimension_semantics<parallel>, #tpu.dimension_semantics<arbitrary>], iteration_bounds = array<i64: 1, 1>, scalar_prefetch = 0 : i64, scratch_operands = 1 : i64, tpu.core_type = #tpu.core_type<tc>, window_params = [{transform_indices = @transform_0, window_bounds = array<i64: 8, 32>}, {transform_indices = @transform_1, window_bounds = array<i64: 8, 1>}, {transform_indices = @transform_2, window_bounds = array<i64: 8, 128>}]} {
    %c0_i32 = arith.constant 0 : i32
    %0 = arith.cmpi eq, %arg1, %c0_i32 : i32
    %1 = arith.extui %0 : i1 to i32
    %c0_i32_0 = arith.constant 0 : i32
    %2 = arith.cmpi ne, %1, %c0_i32_0 : i32
    scf.if %2 {
      %cst_14 = arith.constant 0.000000e+00 : f32
      %30 = vector.broadcast %cst_14 : f32 to vector<8x1xf32>
      %c0_15 = arith.constant 0 : index
      %c0_16 = arith.constant 0 : index
      %31 = vector.load %arg5[%c0_15, %c0_16] : memref<8x1xf32, #tpu.memory_space<vmem>>, vector<8x1xf32>
      tpu.vector_store %arg5[%c0_15, %c0_16], %30 {strides = array<i32>} : memref<8x1xf32, #tpu.memory_space<vmem>>, vector<8x1xf32>,
    } else {
    }
    %c0 = arith.constant 0 : index
    %c0_1 = arith.constant 0 : index
    %3 = vector.load %arg2[%c0, %c0_1] : memref<8x32xf32, #tpu.memory_space<vmem>>, vector<8x32xf32>
    %c0_2 = arith.constant 0 : index
    %c0_3 = arith.constant 0 : index
    %4 = vector.load %arg3[%c0_2, %c0_3] : memref<8x1xi32, #tpu.memory_space<vmem>>, vector<8x1xi32>
    %5 = tpu.iota {dimensions = array<i32: 1>} : vector<8x32xi32>
    %cst = arith.constant dense<0xFF800000> : vector<8xf32>
    %6 = vector.multi_reduction <maximumf>, %3, %cst [1] : vector<8x32xf32> to vector<8xf32>
    %7 = vector.shape_cast %6 : vector<8xf32> to vector<8x1xf32>
    %8 = vector.broadcast %7 : vector<8x1xf32> to vector<8x32xf32>
    %9 = arith.subf %3, %8 : vector<8x32xf32>
    %10 = math.exp %9 : vector<8x32xf32>
    %cst_4 = arith.constant dense<0.000000e+00> : vector<8xf32>
    %11 = vector.multi_reduction <add>, %10, %cst_4 [1] : vector<8x32xf32> to vector<8xf32>
    %12 = vector.shape_cast %11 : vector<8xf32> to vector<8x1xf32>
    %13 = math.log %12 : vector<8x1xf32>
    %14 = vector.broadcast %4 : vector<8x1xi32> to vector<8x32xi32>
    %15 = arith.cmpi eq, %5, %14 : vector<8x32xi32>
    %cst_5 = arith.constant 0.903124988 : f32
    %cst_6 = arith.constant 3.125000e-03 : f32
    %16 = vector.broadcast %cst_5 : f32 to vector<8x32xf32>
    %17 = vector.broadcast %cst_6 : f32 to vector<8x32xf32>
    %18 = arith.select %15, %16, %17 : vector<8x32xi1>, vector<8x32xf32>
    %19 = arith.addf %7, %13 : vector<8x1xf32>
    %20 = arith.mulf %18, %3 : vector<8x32xf32>
    %cst_7 = arith.constant dense<0.000000e+00> : vector<8xf32>
    %21 = vector.multi_reduction <add>, %20, %cst_7 [1] : vector<8x32xf32> to vector<8xf32>
    %22 = vector.shape_cast %21 : vector<8xf32> to vector<8x1xf32>
    %23 = arith.subf %19, %22 : vector<8x1xf32>
    %c0_8 = arith.constant 0 : index
    %c0_9 = arith.constant 0 : index
    %24 = vector.load %arg5[%c0_8, %c0_9] : memref<8x1xf32, #tpu.memory_space<vmem>>, vector<8x1xf32>
    %25 = arith.addf %24, %23 : vector<8x1xf32>
    %c0_10 = arith.constant 0 : index
    %c0_11 = arith.constant 0 : index
    %26 = vector.load %arg5[%c0_10, %c0_11] : memref<8x1xf32, #tpu.memory_space<vmem>>, vector<8x1xf32>
    tpu.vector_store %arg5[%c0_10, %c0_11], %25 {strides = array<i32>} : memref<8x1xf32, #tpu.memory_space<vmem>>, vector<8x1xf32>,
    %c0_i32_12 = arith.constant 0 : i32
    %27 = arith.cmpi eq, %arg1, %c0_i32_12 : i32
    %28 = arith.extui %27 : i1 to i32
    %c0_i32_13 = arith.constant 0 : i32
    %29 = arith.cmpi ne, %28, %c0_i32_13 : i32
    scf.if %29 {
      %c0_14 = arith.constant 0 : index
      %c0_15 = arith.constant 0 : index
      %30 = vector.load %arg5[%c0_14, %c0_15] : memref<8x1xf32, #tpu.memory_space<vmem>>, vector<8x1xf32>
      %cst_16 = arith.constant dense<0.000000e+00> : vector<1xf32>
      %31 = vector.multi_reduction <add>, %30, %cst_16 [0] : vector<8x1xf32> to vector<1xf32>
      %32 = vector.shape_cast %31 : vector<1xf32> to vector<1x1xf32>
      %33 = tpu.iota {dimensions = array<i32: 0>} : vector<8x128xi32>
      %34 = tpu.iota {dimensions = array<i32: 1>} : vector<8x128xi32>
      %c0_i32_17 = arith.constant 0 : i32
      %35 = vector.broadcast %c0_i32_17 : i32 to vector<8x128xi32>
      %36 = arith.cmpi eq, %33, %35 : vector<8x128xi32>
      %c0_i32_18 = arith.constant 0 : i32
      %37 = vector.broadcast %c0_i32_18 : i32 to vector<8x128xi32>
      %38 = arith.cmpi eq, %34, %37 : vector<8x128xi32>
      %39 = arith.andi %36, %38 : vector<8x128xi1>
      %cst_19 = arith.constant 0.000000e+00 : f32
      %40 = vector.shape_cast %32 : vector<1x1xf32> to vector<1x1xf32>
      %41 = vector.broadcast %40 : vector<1x1xf32> to vector<8x128xf32>
      %42 = vector.broadcast %cst_19 : f32 to vector<8x128xf32>
      %43 = arith.select %39, %41, %42 : vector<8x128xi1>, vector<8x128xf32>
      %c0_20 = arith.constant 0 : index
      %c0_21 = arith.constant 0 : index
      %44 = vector.load %arg4[%c0_20, %c0_21] : memref<8x128xf32, #tpu.memory_space<vmem>>, vector<8x128xf32>
      tpu.vector_store %arg4[%c0_20, %c0_21], %43 {strides = array<i32>} : memref<8x128xf32, #tpu.memory_space<vmem>>, vector<8x128xf32>,
    } else {
    }
    return
  }
  func.func @transform_0(%arg0: i32, %arg1: i32) -> (i32, i32) {
    %c1_i32 = arith.constant 1 : i32
    %0 = arith.muli %arg0, %c1_i32 : i32
    %1 = arith.addi %0, %arg1 : i32
    %c0_i32 = arith.constant 0 : i32
    %2 = arith.minsi %1, %c0_i32 : i32
    %c0_i32_0 = arith.constant 0 : i32
    %c0_i32_1 = arith.constant 0 : i32
    return %2, %c0_i32_0 : i32, i32
  }
  func.func @transform_1(%arg0: i32, %arg1: i32) -> (i32, i32) {
    %c1_i32 = arith.constant 1 : i32
    %0 = arith.muli %arg0, %c1_i32 : i32
    %1 = arith.addi %0, %arg1 : i32
    %c0_i32 = arith.constant 0 : i32
    %2 = arith.minsi %1, %c0_i32 : i32
    %c0_i32_0 = arith.constant 0 : i32
    %c0_i32_1 = arith.constant 0 : i32
    return %2, %c0_i32_0 : i32, i32
  }
  func.func @transform_2(%arg0: i32, %arg1: i32) -> (i32, i32) {
    %c0_i32 = arith.constant 0 : i32
    %c0_i32_0 = arith.constant 0 : i32
    return %arg0, %c0_i32 : i32, i32
  }
}

</mosaic_0001>

<bundles_post_ra>
// kernel: tpu_custom_call.1
= control target key start
LH: loop header
LB: loop body
LE: loop exit
PB: predicated region body
PF: predicated region fallthrough
CT: control target
= control target key end

     0   :  { %vm76_vm0 = vcmask 261120   ;;  %s215_s0 = inlined_call_operand.vmem [shape: f32[8,32], index: 0, kind: input, shape index: {}]   ;;  %s216_s1 = inlined_call_operand.vmem [shape: s32[8,1], index: 1, kind: input, shape index: {}]   ;;  %s217_s2 = inlined_call_operand.hbm [shape: f32[8,128], index: 2, kind: output, shape index: {}]  }
   0x1   :  { %v72_v0 = vld [vmem:[%s215_s0] sm:$0xff] }
   0x2   :  { %7 = vsyncpa [#allocation4], 0  ;;  %v77_v1 = vsel %vm76_vm0, %v72_v0, -inf  ;;  %v184_v2 = vmov 0   ;;  %v73_v3 = vld [vmem:[%s216_s1] sm:$0xff]  ;;  %v74_v7 = vlaneseq  ;;  %vm70_vm2 = vcmask 7168  }
   0x3   :  { %156 = vset.pattern.permute.xlu0 %v184_v2  ;;  %157 = vset.pattern.permute.xlu1 %v184_v2  ;;  %v185_v10 = vmov 0.003125   ;;  %v186_v16 = vmov 0.0   ;;  %s187_s0 = smov [#allocation3]  }
   0x4   :  { %78 = vmax.xlane.f32.xlu0 %v77_v1  ;;  %v75_v8 = vand.u32 127, %v74_v7  ;;  %71 = vst.msk [vmem:[#allocation2] sm:$0xff] %vm70_vm2, %v186_v16  ;;  %v115_v33 = vshrl.u32 %v74_v7, 7  ;;  %s132_s1 = sshll.u32 %s187_s0, 4  ;;  %s133_s1 = int_to_ptr.vmem [resolvable:$true] %s132_s1 }
   0x5   :  { %s162_s13 = scalar_lea.vmem %s133_s1, 128  ;;  %p167_p1 = scmp.lt.s32.totalorder %s133_s1, %s133_s1 }
   0x6   :  { %vm116_vm3 = vcmp.eq.s32.totalorder %v115_v33, 0  ;;  %vm117_vm4 = vcmp.eq.s32.totalorder %v75_v8, 0  ;;  %p163_p0 = scmp.ne.s32.totalorder %s133_s1, %s162_s13  ;;  %p168_p2 = scmp.lt.s32.totalorder %s162_s13, %s162_s13 }
   0x7   :  { %vm118_vm5 = vmand %vm116_vm3, %vm117_vm4 }
   0x8   :  { %p169_p3 = por %p168_p2, %p167_p1 }
   0xa   :  { %p170_p4 = pnand %p169_p3, %p163_p0 }
   0xb   :  { %v99_v22 = vld [vmem:[#allocation2] sm:$0xff] }
  0x1a   :  { %89 = vperm.xlu0 %156, %v73_v3  }
  0x8d   :  { %v79_v4 = vpop.xlane.xlu0 %78 }
  0x8e   :  { %v80_v5 = vsub.f32 %v72_v0, %v79_v4 }
  0x90   :  { %v81_v6 = vmul.f32 1.442695, %v80_v5 }
  0x92   :  { %158 = vpow2.f32 %v81_v6 }
  0x95   :  { %v90_v9 = vpop.permute.xlu0 %89 }
  0x96   :  { %vm91_vm1 = vcmp.eq.s32.totalorder %v75_v8, %v90_v9 }
  0x97   :  { %v92_v11 = vsel %vm91_vm1, 0.903125, %v185_v10 }
  0x98   :  { %v94_v12 = vmul.f32 %v92_v11, %v72_v0 }
  0x9a   :  { %v95_v15 = vsel %vm76_vm0, %v94_v12, 0.0 }
  0x9f   :  { %v159_v13 = vpop.eup %158 }
  0xa0   :  { %v83_v14 = vsel %vm76_vm0, %v159_v13, 0.0 }
  0xa1   :  { %84 = vadd.xlane.f32.xlu1 %v83_v14 }
  0xa5   :  { %96 = vadd.xlane.f32.xlu1 %v95_v15 }
 0x12a   :  { %v85_v17 = vpop.xlane.xlu1 %84 }
 0x12b   :  { %160 = vlog2.f32 %v85_v17 }
 0x12e   :  { %v97_v20 = vpop.xlane.xlu1 %96 }
 0x138   :  { %v161_v18 = vpop.eup %160 }
 0x139   :  { %v87_v19 = vmul.f32 0.6931472, %v161_v18 }
 0x13b   :  { %v93_v21 = vadd.f32 %v87_v19, %v79_v4 }
 0x13d   :  { %v98_v23 = vsub.f32 %v93_v21, %v97_v20 }
 0x13f   :  { %v100_v24 = vadd.f32 %v99_v22, %v98_v23 }
 0x141   :  { %102 = vst.msk [vmem:[#allocation2] sm:$0xff] %vm70_vm2, %v100_v24 }
 0x148   :  { %v106_v25 = vld [vmem:[#allocation2] sm:$0xff] }
 0x149   :  { %v107_v26 = vsel %vm70_vm2, %v106_v25, 0.0 }
 0x14a   :  { %v108_v27 = vrot.slane %v107_v26, 4 }
 0x14c   :  { %v109_v28 = vadd.f32 %v108_v27, %v107_v26 }
 0x14e   :  { %v110_v29 = vrot.slane %v109_v28, 2 }
 0x150   :  { %v111_v30 = vadd.f32 %v110_v29, %v109_v28 }
 0x152   :  { %v112_v31 = vrot.slane %v111_v30, 1 }
 0x154   :  { %v113_v32 = vadd.f32 %v112_v31, %v111_v30 }
 0x156   :  { %121 = vperm.xlu1 %157, %v113_v32  }
 0x1d1   :  { %v122_v34 = vpop.permute.xlu1 %121 }
 0x1d2   :  { %v124_v35 = vsel %vm118_vm5, %v122_v34, 0.0 }
 0x1d3   :  { %125 = vst [vmem:[#allocation3] sm:$0xff] %v124_v35 }
 0x1d4   :  { %173 = shalt.err (!%p170_p4)
}
 0x1d5   :  { %135 = dma.vmem_to_hbm [thread:$0]  %s133_s1, 128, %s217_s2, [#allocation4]  }
 0x1d6   :  { %182 = dma.done.wait [#allocation4], 128  }
 0x1d7   :  { %183 = vsyncadd [#allocation4], 4294967168 }
 0x1d8   :  { %139 = vsyncpa [#allocation4], 1 }

</bundles_post_ra>
